<compile_context>
chip_gen: v6e
topology: v6e:2x2x1
jax: 0.10.0
libtpu: 0.0.40
codegen_flags: <defaults>
</compile_context>

<pallas_src>
import functools

import jax
import jax.numpy as jnp
from jax.experimental import pallas as pl
from jax.experimental.pallas import tpu as pltpu


def _round_up(x, m):
    return ((x + m - 1) // m) * m


def condgen_kernel(x_ref, w1_ref, b1_ref, w2_ref, b2_ref, scale_ref, shift_ref,
                   out_ref, *, precision):
    # Transposed, packed layout — rows (M) on the 128-lane axis:
    #   x_ref:   (d_in,      TILE_M)   packed [obs; noise]^T
    #   w1_ref:  (H,         d_in)     b1_ref: (H, 1)
    #   w2_ref:  (d_sig_pad, H)        b2/scale/shift: (d_sig_pad, 1)
    #   out_ref: (d_sig_pad, TILE_M)

    # layer 1 (single dot, K = d_in):  h^T = W1^T x^T + b1
    h = jnp.dot(w1_ref[...], x_ref[...],
                preferred_element_type=jnp.float32, precision=precision)
    h = h + b1_ref[...]
    h = jnp.where(h > 0.0, h, 0.2 * h)            # LeakyReLU(0.2) on the VPU

    # layer 2:  s^T = W2^T h^T + b2, tanh on the EUP -> signal in [-1, 1]
    s = jnp.dot(w2_ref[...], h,
                preferred_element_type=jnp.float32, precision=precision)
    s = jnp.tanh(s + b2_ref[...])

    # condGen rescale folded to one FMA:
    #   mins + (s + 1) * (maxs - mins) / 2  ==  s * scale + shift
    out_ref[...] = s * scale_ref[...] + shift_ref[...]


def cond_gen_forward(obs_data, noise, params, mins, maxs, *,
                     tile_m_max=16384, matmul_dtype=jnp.float32):
    """obs_data: (B, T, D_obs), noise: (B, T, D_noise).  Returns (B, T, D_sig)."""
    w1, b1, w2, b2 = params
    B, T, d_obs = obs_data.shape
    d_noise = noise.shape[-1]
    d_in, hidden = w1.shape
    d_sig = w2.shape[1]
    assert d_in == d_obs + d_noise
    M = B * T

    f32 = jnp.float32
    d_sig_pad = _round_up(d_sig, 8)      # full-sublane (unmasked) output stores

    # Divisor-aware tiling: keep >=2 grid steps when possible (v7x megacore),
    # and keep last-tile padding < 128 rows instead of up to a full tile.
    m_pad0 = _round_up(M, 128)
    target_tiles = max(2, pl.cdiv(m_pad0, tile_m_max))
    tile_m = min(m_pad0, _round_up(pl.cdiv(m_pad0, target_tiles), 128))
    m_pad = _round_up(m_pad0, tile_m)
    n_tiles = m_pad // tile_m

    # Single fused prepass: concat + transpose + pad -> one (d_in, m_pad) slab.
    x_t = jnp.concatenate(
        [obs_data.reshape(M, d_obs).T, noise.reshape(M, d_noise).T], axis=0)
    x_t = jnp.pad(x_t, ((0, 0), (0, m_pad - M))).astype(matmul_dtype)

    w1_t = w1.T.astype(matmul_dtype)                            # (H, d_in)
    b1_t = b1.reshape(hidden, 1).astype(f32)                    # (H, 1)
    w2_t = jnp.zeros((d_sig_pad, hidden), matmul_dtype)
    w2_t = w2_t.at[:d_sig].set(w2.T.astype(matmul_dtype))       # (d_sig_pad, H)
    b2_t = jnp.zeros((d_sig_pad, 1), f32).at[:d_sig, 0].set(
        b2.reshape(-1).astype(f32))
    scale = ((maxs.astype(f32) - mins.astype(f32)) * 0.5).reshape(d_sig)
    shift = mins.astype(f32).reshape(d_sig) + scale
    scale_p = jnp.zeros((d_sig_pad, 1), f32).at[:d_sig, 0].set(scale)
    shift_p = jnp.zeros((d_sig_pad, 1), f32).at[:d_sig, 0].set(shift)

    precision = (jax.lax.Precision.HIGHEST if matmul_dtype == jnp.float32
                 else jax.lax.Precision.DEFAULT)

    # Activations / outputs tiled over rows; weights and constants stay
    # VMEM-resident across the whole grid (index_map -> (0, 0)).
    tiled = lambda rows: pl.BlockSpec((rows, tile_m), lambda i: (0, i))
    resident = lambda shape: pl.BlockSpec(shape, lambda i: (0, 0))

    itemsize = jnp.dtype(matmul_dtype).itemsize
    flops = 2 * m_pad * (d_in * hidden + hidden * d_sig_pad)
    bytes_accessed = (itemsize * (m_pad * d_in + d_in * hidden
                                  + d_sig_pad * hidden)
                      + 4 * (m_pad * d_sig_pad + hidden + 3 * d_sig_pad))

    out_t = pl.pallas_call(
        functools.partial(condgen_kernel, precision=precision),
        out_shape=jax.ShapeDtypeStruct((d_sig_pad, m_pad), f32),
        grid=(n_tiles,),
        in_specs=[
            tiled(d_in),                      # packed [obs; noise]^T
            resident((hidden, d_in)),         # W1^T
            resident((hidden, 1)),            # b1
            resident((d_sig_pad, hidden)),    # W2^T (rows zero-padded to 8)
            resident((d_sig_pad, 1)),         # b2
            resident((d_sig_pad, 1)),         # scale
            resident((d_sig_pad, 1)),         # shift
        ],
        out_specs=tiled(d_sig_pad),
        compiler_params=pltpu.CompilerParams(
            dimension_semantics=("parallel",)),
        cost_estimate=pl.CostEstimate(
            flops=flops,
            transcendentals=m_pad * d_sig_pad,
            bytes_accessed=bytes_accessed),
    )(x_t, w1_t, b1_t, w2_t, b2_t, scale_p, shift_p)

    # Drop padded rows/cols, restore (B, T, D_sig) layout.
    return out_t[:d_sig, :M].T.reshape(B, T, d_sig)


def make_params(key, d_in, hidden, d_sig):
    k1, k2, k3, k4 = jax.random.split(key, 4)
    w1 = jax.random.normal(k1, (d_in, hidden), jnp.float32) * 0.1
    b1 = jax.random.normal(k2, (1, hidden), jnp.float32) * 0.01
    w2 = jax.random.normal(k3, (hidden, d_sig), jnp.float32) * 0.1
    b2 = jax.random.normal(k4, (1, d_sig), jnp.float32) * 0.01
    return w1, b1, w2, b2


def _reference(obs_data, noise, params, mins, maxs):
    w1, b1, w2, b2 = params
    B, T, _ = obs_data.shape
    hp = jax.lax.Precision.HIGHEST
    x = jnp.concatenate([obs_data, noise], axis=-1).reshape(B * T, -1)
    h = jnp.dot(x, w1, precision=hp) + b1
    h = jnp.where(h > 0.0, h, 0.2 * h)
    s = jnp.tanh(jnp.dot(h, w2, precision=hp) + b2)
    r = mins + (s + 1.0) * (maxs - mins) / 2.0
    return r.reshape(B, T, -1)


if __name__ == "__main__":
    # small shapes consistent with a conditional time-series generator
    B, T = 2, 8          # batch, sequence length
    D_OBS, D_NOISE = 4, 4
    HIDDEN = 32
    D_SIG = 4            # signal dimensions (MAXES / MINS length)

    key = jax.random.PRNGKey(0)
    k_obs, k_noise, k_par = jax.random.split(key, 3)

    obs_data = jax.random.normal(k_obs, (B, T, D_OBS), jnp.float32)
    noise = jax.random.normal(k_noise, (B, T, D_NOISE), jnp.float32)
    params = make_params(k_par, D_OBS + D_NOISE, HIDDEN, D_SIG)

    # MAXES / MINS per signal dimension (deterministic)
    maxs = jnp.array([1.0, 2.0, 3.0, 4.0], jnp.float32)
    mins = jnp.array([-1.0, -2.0, 0.0, 0.5], jnp.float32)

    out = cond_gen_forward(obs_data, noise, params, mins, maxs)
    out = jax.block_until_ready(out)

    # correctness vs plain-JAX reference of the condGen forward
    ref = _reference(obs_data, noise, params, mins, maxs)
    assert out.shape == (B, T, D_SIG)
    assert bool(jnp.allclose(out, ref, atol=1e-5, rtol=1e-5))
    # rescaled signal must lie in [mins, maxs]
    assert bool(jnp.all(out >= mins.reshape(1, 1, -1) - 1e-5))
    assert bool(jnp.all(out <= maxs.reshape(1, 1, -1) + 1e-5))

    print("KERNEL_OK")
</pallas_src>

<mosaic_0001>
module attributes {stable_mosaic.version = 11 : i64} {
  func.func @condgen_kernel(%arg0: i32, %arg1: memref<8x128xf32, #tpu.memory_space<vmem>>, %arg2: memref<32x8xf32, #tpu.memory_space<vmem>>, %arg3: memref<32x1xf32, #tpu.memory_space<vmem>>, %arg4: memref<8x32xf32, #tpu.memory_space<vmem>>, %arg5: memref<8x1xf32, #tpu.memory_space<vmem>>, %arg6: memref<8x1xf32, #tpu.memory_space<vmem>>, %arg7: memref<8x1xf32, #tpu.memory_space<vmem>>, %arg8: memref<8x128xf32, #tpu.memory_space<vmem>>) attributes {dimension_semantics = [#tpu.dimension_semantics<parallel>], iteration_bounds = array<i64: 1>, scalar_prefetch = 0 : i64, scratch_operands = 0 : i64, tpu.core_type = #tpu.core_type<tc>, window_params = [{transform_indices = @transform_0, window_bounds = array<i64: 8, 128>}, {pipeline_mode = #tpu.pipeline_mode<synchronous>, transform_indices = @transform_1, window_bounds = array<i64: 32, 8>}, {pipeline_mode = #tpu.pipeline_mode<synchronous>, transform_indices = @transform_2, window_bounds = array<i64: 32, 1>}, {pipeline_mode = #tpu.pipeline_mode<synchronous>, transform_indices = @transform_3, window_bounds = array<i64: 8, 32>}, {pipeline_mode = #tpu.pipeline_mode<synchronous>, transform_indices = @transform_4, window_bounds = array<i64: 8, 1>}, {pipeline_mode = #tpu.pipeline_mode<synchronous>, transform_indices = @transform_5, window_bounds = array<i64: 8, 1>}, {pipeline_mode = #tpu.pipeline_mode<synchronous>, transform_indices = @transform_6, window_bounds = array<i64: 8, 1>}, {transform_indices = @transform_7, window_bounds = array<i64: 8, 128>}]} {
    %c0 = arith.constant 0 : index
    %c0_0 = arith.constant 0 : index
    %0 = vector.load %arg2[%c0, %c0_0] : memref<32x8xf32, #tpu.memory_space<vmem>>, vector<32x8xf32>
    %c0_1 = arith.constant 0 : index
    %c0_2 = arith.constant 0 : index
    %1 = vector.load %arg1[%c0_1, %c0_2] : memref<8x128xf32, #tpu.memory_space<vmem>>, vector<8x128xf32>
    %cst = arith.constant dense<0.000000e+00> : vector<32x128xf32>
    %2 = tpu.matmul %0, %1, %cst {dimension_numbers = #tpu.dot_dimension_numbers<[1], [0], [0], [1], [0, 0, 1, 1], [], []>, precision = #tpu.contract_precision<fp32>} : vector<32x8xf32>, vector<8x128xf32>, vector<32x128xf32> -> vector<32x128xf32>
    %c0_3 = arith.constant 0 : index
    %c0_4 = arith.constant 0 : index
    %3 = vector.load %arg3[%c0_3, %c0_4] : memref<32x1xf32, #tpu.memory_space<vmem>>, vector<32x1xf32>
    %4 = vector.broadcast %3 : vector<32x1xf32> to vector<32x128xf32>
    %5 = arith.addf %2, %4 : vector<32x128xf32>
    %cst_5 = arith.constant 0.000000e+00 : f32
    %6 = vector.broadcast %cst_5 : f32 to vector<32x128xf32>
    %7 = arith.cmpf ogt, %5, %6 : vector<32x128xf32>
    %cst_6 = arith.constant 2.000000e-01 : f32
    %8 = vector.broadcast %cst_6 : f32 to vector<32x128xf32>
    %9 = arith.mulf %8, %5 : vector<32x128xf32>
    %10 = arith.select %7, %5, %9 : vector<32x128xi1>, vector<32x128xf32>
    %c0_7 = arith.constant 0 : index
    %c0_8 = arith.constant 0 : index
    %11 = vector.load %arg4[%c0_7, %c0_8] : memref<8x32xf32, #tpu.memory_space<vmem>>, vector<8x32xf32>
    %cst_9 = arith.constant dense<0.000000e+00> : vector<8x128xf32>
    %12 = tpu.matmul %11, %10, %cst_9 {dimension_numbers = #tpu.dot_dimension_numbers<[1], [0], [0], [1], [0, 0, 1, 1], [], []>, precision = #tpu.contract_precision<fp32>} : vector<8x32xf32>, vector<32x128xf32>, vector<8x128xf32> -> vector<8x128xf32>
    %c0_10 = arith.constant 0 : index
    %c0_11 = arith.constant 0 : index
    %13 = vector.load %arg5[%c0_10, %c0_11] : memref<8x1xf32, #tpu.memory_space<vmem>>, vector<8x1xf32>
    %14 = vector.broadcast %13 : vector<8x1xf32> to vector<8x128xf32>
    %15 = arith.addf %12, %14 : vector<8x128xf32>
    %16 = math.tanh %15 : vector<8x128xf32>
    %c0_12 = arith.constant 0 : index
    %c0_13 = arith.constant 0 : index
    %17 = vector.load %arg6[%c0_12, %c0_13] : memref<8x1xf32, #tpu.memory_space<vmem>>, vector<8x1xf32>
    %18 = vector.broadcast %17 : vector<8x1xf32> to vector<8x128xf32>
    %19 = arith.mulf %16, %18 : vector<8x128xf32>
    %c0_14 = arith.constant 0 : index
    %c0_15 = arith.constant 0 : index
    %20 = vector.load %arg7[%c0_14, %c0_15] : memref<8x1xf32, #tpu.memory_space<vmem>>, vector<8x1xf32>
    %21 = vector.broadcast %20 : vector<8x1xf32> to vector<8x128xf32>
    %22 = arith.addf %19, %21 : vector<8x128xf32>
    %c0_16 = arith.constant 0 : index
    %c0_17 = arith.constant 0 : index
    %23 = vector.load %arg8[%c0_16, %c0_17] : memref<8x128xf32, #tpu.memory_space<vmem>>, vector<8x128xf32>
    tpu.vector_store %arg8[%c0_16, %c0_17], %22 {strides = array<i32>} : memref<8x128xf32, #tpu.memory_space<vmem>>, vector<8x128xf32>,
    return
  }
  func.func @transform_0(%arg0: i32) -> (i32, i32) {
    %c0_i32 = arith.constant 0 : i32
    %c0_i32_0 = arith.constant 0 : i32
    return %c0_i32, %arg0 : i32, i32
  }
  func.func @transform_1(%arg0: i32) -> (i32, i32) {
    %c0_i32 = arith.constant 0 : i32
    %c0_i32_0 = arith.constant 0 : i32
    %c0_i32_1 = arith.constant 0 : i32
    return %c0_i32, %c0_i32_0 : i32, i32
  }
  func.func @transform_2(%arg0: i32) -> (i32, i32) {
    %c0_i32 = arith.constant 0 : i32
    %c0_i32_0 = arith.constant 0 : i32
    %c0_i32_1 = arith.constant 0 : i32
    return %c0_i32, %c0_i32_0 : i32, i32
  }
  func.func @transform_3(%arg0: i32) -> (i32, i32) {
    %c0_i32 = arith.constant 0 : i32
    %c0_i32_0 = arith.constant 0 : i32
    %c0_i32_1 = arith.constant 0 : i32
    return %c0_i32, %c0_i32_0 : i32, i32
  }
  func.func @transform_4(%arg0: i32) -> (i32, i32) {
    %c0_i32 = arith.constant 0 : i32
    %c0_i32_0 = arith.constant 0 : i32
    %c0_i32_1 = arith.constant 0 : i32
    return %c0_i32, %c0_i32_0 : i32, i32
  }
  func.func @transform_5(%arg0: i32) -> (i32, i32) {
    %c0_i32 = arith.constant 0 : i32
    %c0_i32_0 = arith.constant 0 : i32
    %c0_i32_1 = arith.constant 0 : i32
    return %c0_i32, %c0_i32_0 : i32, i32
  }
  func.func @transform_6(%arg0: i32) -> (i32, i32) {
    %c0_i32 = arith.constant 0 : i32
    %c0_i32_0 = arith.constant 0 : i32
    %c0_i32_1 = arith.constant 0 : i32
    return %c0_i32, %c0_i32_0 : i32, i32
  }
  func.func @transform_7(%arg0: i32) -> (i32, i32) {
    %c0_i32 = arith.constant 0 : i32
    %c0_i32_0 = arith.constant 0 : i32
    return %c0_i32, %arg0 : i32, i32
  }
}

</mosaic_0001>

<bundles_post_ra>
// kernel: tpu_custom_call.1
= control target key start
LH: loop header
LB: loop body
LE: loop exit
PB: predicated region body
PF: predicated region fallthrough
CT: control target
= control target key end

     0   :  { %vm56_vm0 = vcmask 64512   ;;  %v1386_v8 = vmov 0   ;;  %s1574_s0 = inlined_call_operand.vmem [shape: f32[8,128], index: 0, kind: input, shape index: {}]   ;;  %s1575_s1 = inlined_call_operand.vmem [shape: f32[32,8], index: 1, kind: input, shape index: {}]   ;;  %s1576_s2 = inlined_call_operand.vmem [shape: f32[32,1], index: 2, kind: input, shape index: {}]   ;;  %s1577_s3 = inlined_call_operand.vmem [shape: f32[8,32], index: 3, kind: input, shape index: {}]   ;;  %s1578_s4 = inlined_call_operand.vmem [shape: f32[8,1], index: 4, kind: input, shape index: {}]   ;;  %s1579_s5 = inlined_call_operand.vmem [shape: f32[8,1], index: 5, kind: input, shape index: {}]   ;;  %s1580_s6 = inlined_call_operand.vmem [shape: f32[8,1], index: 6, kind: input, shape index: {}]   ;;  %s1581_s7 = inlined_call_operand.hbm [shape: f32[8,128], index: 7, kind: output, shape index: {}]  }
   0x1   :  { %v31_v0 = vld [vmem:[%s1574_s0] sm:$0xff]  ;;  %v28_v2 = vld [vmem:[%s1575_s1 + $0x8] sm:$0xff]  ;;  %v29_v6 = vld [vmem:[%s1575_s1 + $0x10] sm:$0xff]  ;;  %1361 = vset.pattern.permute.xlu1 %v1386_v8  ;;  %1360 = vset.pattern.permute.xlu0 %v1386_v8 }
   0x2   :  { %v27_v1 = vld [vmem:[%s1575_s1] sm:$0xff]  ;;  %v1439_v3 = vand.u32 4294901760, %v31_v0  ;;  %v61_v5 = vsel %vm56_vm0, %v28_v2, 0  ;;  %v30_v7 = vld [vmem:[%s1575_s1 + $0x18] sm:$0xff]  ;;  %v64_v12 = vsel %vm56_vm0, %v29_v6, 0  ;;  %v33_v14 = vld [vmem:[%s1576_s2 + $0x8] sm:$0xff] }
   0x3   :  { %v58_v4 = vsel %vm56_vm0, %v27_v1, 0  ;;  %v35_v9 = vld [vmem:[%s1576_s2 + $0x18] sm:$0xff]  ;;  %v1452_v11 = vand.u32 4294901760, %v61_v5  ;;  %v67_v13 = vsel %vm56_vm0, %v30_v7, 0  ;;  %v1459_v16 = vand.u32 4294901760, %v64_v12  ;;  %43 = vperm.xlu1 %1361, %v33_v14   ;;  %v34_v18 = vld [vmem:[%s1576_s2 + $0x10] sm:$0xff] }
   0x4   :  { %v1450_v10 = vand.u32 4294901760, %v58_v4  ;;  %53 = vperm.xlu0 %1360, %v35_v9   ;;  %1242 = vmatprep.subr.mxu0 %v1439_v3  ;;  %v207_v15 = vsub.f32 %v31_v0, %v1439_v3  ;;  %v1461_v17 = vand.u32 4294901760, %v67_v13  ;;  %v32_v21 = vld [vmem:[%s1576_s2] sm:$0xff] }
   0x5   :  { %1243 = vmatpush3.msra.mxu0 %v1439_v3  ;;  %v146_v20 = vsub.f32 %v61_v5, %v1452_v11 }
   0x6   :  { %v136_v19 = vsub.f32 %v58_v4, %v1450_v10  ;;  %1252 = vmatprep.mubr.f32.mxu1 %v1450_v10 }
   0x7   :  { %12 = vsyncpa [#allocation3], 0  ;;  %v208_v22 = vand.u32 4294901760, %v207_v15  ;;  %1258 = vmatprep.subr.mxu0 %v207_v15  ;;  %v156_v23 = vsub.f32 %v64_v12, %v1459_v16  ;;  %v166_v24 = vsub.f32 %v67_v13, %v1461_v17  ;;  %v147_v26 = vand.u32 4294901760, %v146_v20  ;;  %38 = vperm.xlu1 %1361, %v32_v21   ;;  %v657_v30 = vld [vmem:[%s1578_s4] sm:$0xff] }
   0x8   :  { %v137_v25 = vand.u32 4294901760, %v136_v19  ;;  %48 = vperm.xlu0 %1360, %v34_v18   ;;  %v1153_v33 = vld [vmem:[%s1579_s5] sm:$0xff]  ;;  %v1387_v42 = vmov 0.0   ;;  %vm1388_vm1 = vmmov 0   ;;  %vm663_vm2 = vcmask 261120  }
   0x9   :  { %v209_v27 = vsub.f32 %v207_v15, %v208_v22  ;;  %v157_v28 = vand.u32 4294901760, %v156_v23  ;;  %v167_v29 = vand.u32 4294901760, %v166_v24  ;;  %v148_v32 = vsub.f32 %v146_v20, %v147_v26  ;;  %v1160_v41 = vld [vmem:[%s1580_s6] sm:$0xff] }
   0xa   :  { %v138_v31 = vsub.f32 %v136_v19, %v137_v25  ;;  %v656_v4 = vld [vmem:[%s1577_s3] sm:$0xff]  ;;  %s1389_s3 = smov [#allocation2]  }
   0xb   :  { %v210_v34 = vand.u32 4294901760, %v209_v27  ;;  %v158_v35 = vsub.f32 %v156_v23, %v157_v28  ;;  %v168_v36 = vsub.f32 %v166_v24, %v167_v29  ;;  %v149_v38 = vand.u32 4294901760, %v148_v32  ;;  %1156 = vperm.xlu1 %1361, %v1153_v33   ;;  %s1174_s21 = sshll.u32 %s1389_s3, 4  ;;  %s1175_s21 = int_to_ptr.vmem [resolvable:$true] %s1174_s21 }
   0xc   :  { %v139_v37 = vand.u32 4294901760, %v138_v31  ;;  %660 = vperm.xlu0 %1360, %v657_v30   ;;  %s1364_s22 = scalar_lea.vmem %s1175_s21, 128  ;;  %p1369_p1 = scmp.lt.s32.totalorder %s1175_s21, %s1175_s21 }
   0xd   :  { %1250 = vmatprep.subr.mxu1 %v210_v34  ;;  %v159_v39 = vand.u32 4294901760, %v158_v35  ;;  %v169_v40 = vand.u32 4294901760, %v168_v36  ;;  %p1365_p0 = scmp.ne.s32.totalorder %s1175_s21, %s1364_s22  ;;  %p1370_p2 = scmp.lt.s32.totalorder %s1364_s22, %s1364_s22 }
   0xe   :  { %1244 = vmatprep.mubr.f32.mxu0 %v139_v37  ;;  %1251 = vmatpush3.msra.mxu1 %v210_v34 }
   0xf   :  { %1245 = vmatmul.mubr.f32.vlgmr.msra.gmra.mxu0 %v149_v38  ;;  %1253 = vmatmul.mubr.f32.vlgmr.msra.gmra.mxu1 %v1452_v11  ;;  %p1371_p3 = por %p1370_p2, %p1369_p1 }
  0x10   :  { %1259 = vmatpush3.msra.mxu0 %v207_v15  ;;  %1266 = vmatprep.subr.mxu1 %v1439_v3 }
  0x11   :  { %1267 = vmatpush3.msra.mxu1 %v1439_v3  ;;  %1247 = vmatprep.mubr.f32.mxu0 %v159_v39  ;;  %p1372_p4 = pnand %p1371_p3, %p1365_p0 }
  0x12   :  { %1255 = vmatprep.mubr.f32.mxu1 %v1459_v16  ;;  %1274 = vmatprep.subr.mxu0 %v208_v22 }
  0x13   :  { %1248 = vmatmul.mubr.f32.gmra.mxu0 %v169_v40  ;;  %1256 = vmatmul.mubr.f32.gmra.mxu1 %v1461_v17 }
  0x14   :  { %1260 = vmatprep.mubr.f32.mxu0 %v136_v19  ;;  %1268 = vmatprep.mubr.f32.mxu1 %v137_v25 }
  0x15   :  { %1282 = vmatprep.subr.mxu1 %v1439_v3  ;;  %1163 = vperm.xlu0 %1360, %v1160_v41  }
  0x17   :  { %1261 = vmatmul.mubr.f32.vlgmr.msra.gmra.mxu0 %v146_v20  ;;  %1269 = vmatmul.mubr.f32.vlgmr.msra.gmra.mxu1 %v147_v26 }
  0x18   :  { %1275 = vmatpush3.msra.mxu0 %v208_v22  ;;  %1283 = vmatpush3.msra.mxu1 %v1439_v3 }
  0x19   :  { %1263 = vmatprep.mubr.f32.mxu0 %v156_v23  ;;  %1271 = vmatprep.mubr.f32.mxu1 %v157_v28 }
  0x1a   :  { %1290 = vmatprep.subr.mxu0 %v1387_v42  ;;  %1301 = vmatprep.subr.mxu1 %v1387_v42 }
  0x1b   :  { %1264 = vmatmul.mubr.f32.gmra.mxu0 %v166_v24  ;;  %1272 = vmatmul.mubr.f32.gmra.mxu1 %v167_v29 }
  0x1c   :  { %1276 = vmatprep.mubr.f32.mxu0 %v1450_v10  ;;  %1284 = vmatprep.mubr.f32.mxu1 %v1450_v10 }
  0x1f   :  { %1277 = vmatmul.mubr.f32.vlgmr.msra.gmra.mxu0 %v1452_v11  ;;  %1285 = vmatmul.mubr.f32.vlgmr.msra.gmra.mxu1 %v1452_v11  ;;  %v665_v11 = vsel %vm663_vm2, %v656_v4, 0 }
  0x20   :  { %1279 = vmatprep.mubr.f32.mxu0 %v1459_v16  ;;  %1287 = vmatprep.mubr.f32.mxu1 %v1459_v16  ;;  %v1508_v20 = vand.u32 4294901760, %v665_v11 }
  0x22   :  { %v1511_v31 = vsub.f32 %v665_v11, %v1508_v20 }
  0x23   :  { %1280 = vmatmul.mubr.f32.gmra.mxu0 %v1461_v17  ;;  %1288 = vmatmul.mubr.f32.gmra.mxu1 %v1461_v17 }
  0x24   :  { %1298 = vmatprep.mubr.msk.f32.mxu0 %vm1388_vm1, %v1387_v42  ;;  %1309 = vmatprep.mubr.msk.f32.mxu1 %vm1388_vm1, %v1387_v42  ;;  %v738_v41 = vand.u32 4294901760, %v1511_v31 }
  0x7e   :  { %v44_v43 = vpop.permute.xlu1 %43 }
  0x7f   :  { %v54_v51 = vpop.permute.xlu0 %53 }
  0x82   :  { %v39_v48 = vpop.permute.xlu1 %38 }
  0x83   :  { %v49_v62 = vpop.permute.xlu0 %48 }
  0xcf   :  { %v1246_v44 = vpop.f32.mrf.mxu0  ;;  %v1254_v45 = vpop.f32.mrf.mxu1 }
  0xd0   :  { %v152_v52 = vadd.f32 %v1246_v44, %v44_v43 }
  0xd1   :  { %v141_v46 = vpop.f32.mrf.mxu0  ;;  %v247_v47 = vpop.f32.mrf.mxu1 }
  0xd2   :  { %v142_v55 = vadd.f32 %v141_v46, %v39_v48  ;;  %v254_v58 = vadd.f32 %v1254_v45, %v152_v52 }
  0xd3   :  { %v1249_v49 = vpop.f32.mrf.mxu0  ;;  %v1257_v50 = vpop.f32.mrf.mxu1 }
  0xd4   :  { %v172_v59 = vadd.f32 %v1249_v49, %v54_v51  ;;  %v248_v63 = vadd.f32 %v247_v47, %v142_v55 }
  0xd5   :  { %v161_v53 = vpop.f32.mrf.mxu0  ;;  %v259_v54 = vpop.f32.mrf.mxu1 }
  0xd6   :  { %v162_v1 = vadd.f32 %v161_v53, %v49_v62  ;;  %v266_v5 = vadd.f32 %v1257_v50, %v172_v59  ;;  %v739_v50 = vsub.f32 %v1511_v31, %v738_v41 }
  0xd7   :  { %v1262_v56 = vpop.f32.mrf.mxu0  ;;  %v1270_v57 = vpop.f32.mrf.mxu1 }
  0xd8   :  { %v347_v0 = vadd.f32 %v1262_v56, %v254_v58  ;;  %v260_v12 = vadd.f32 %v259_v54, %v162_v1  ;;  %v740_v56 = vand.u32 4294901760, %v739_v50 }
  0xd9   :  { %v339_v60 = vpop.f32.mrf.mxu0  ;;  %v434_v61 = vpop.f32.mrf.mxu1 }
  0xda   :  { %v340_v6 = vadd.f32 %v339_v60, %v248_v63  ;;  %v443_v9 = vadd.f32 %v1270_v57, %v347_v0 }
  0xdb   :  { %v1265_v2 = vpop.f32.mrf.mxu0  ;;  %v1273_v3 = vpop.f32.mrf.mxu1 }
  0xdc   :  { %v361_v10 = vadd.f32 %v1265_v2, %v266_v5  ;;  %v435_v15 = vadd.f32 %v434_v61, %v340_v6 }
  0xdd   :  { %v353_v7 = vpop.f32.mrf.mxu0  ;;  %v450_v8 = vpop.f32.mrf.mxu1 }
  0xde   :  { %v354_v17 = vadd.f32 %v353_v7, %v260_v12  ;;  %v459_v21 = vadd.f32 %v1273_v3, %v361_v10 }
  0xdf   :  { %v1278_v13 = vpop.f32.mrf.mxu0  ;;  %v1286_v14 = vpop.f32.mrf.mxu1 }
  0xe0   :  { %v539_v16 = vadd.f32 %v1278_v13, %v443_v9  ;;  %v451_v29 = vadd.f32 %v450_v8, %v354_v17  ;;  %v661_v8 = vpop.permute.xlu0 %660 }
  0xe1   :  { %v532_v18 = vpop.f32.mrf.mxu0  ;;  %v622_v19 = vpop.f32.mrf.mxu1 }
  0xe2   :  { %v629_v22 = vadd.f32 %v1286_v14, %v539_v16  ;;  %v533_v23 = vadd.f32 %v532_v18, %v435_v15 }
  0xe3   :  { %v1281_v24 = vpop.f32.mrf.mxu0  ;;  %v1289_v28 = vpop.f32.mrf.mxu1 }
  0xe4   :  { %vm645_vm3 = vcmp.gt.f32.partialorder %v629_v22, 0.0  ;;  %v649_v25 = vmul.f32 0.2, %v629_v22  ;;  %v623_v26 = vadd.f32 %v622_v19, %v533_v23  ;;  %v551_v27 = vadd.f32 %v1281_v24, %v459_v21  ;;  %v1164_v24 = vpop.permute.xlu0 %1163 }
  0xe5   :  { %v544_v30 = vpop.f32.mrf.mxu0  ;;  %v634_v39 = vpop.f32.mrf.mxu1 }
  0xe6   :  { %v653_v32 = vsel %vm645_vm3, %v629_v22, %v649_v25  ;;  %vm644_vm4 = vcmp.gt.f32.partialorder %v623_v26, 0.0  ;;  %v648_v33 = vmul.f32 0.2, %v623_v26  ;;  %v641_v34 = vadd.f32 %v1289_v28, %v551_v27  ;;  %v1157_v22 = vpop.permute.xlu1 %1156 }
  0xe7   :  { %v545_v35 = vadd.f32 %v544_v30, %v451_v29  ;;  %v1513_v36 = vand.u32 4294901760, %v653_v32 }
  0xe8   :  { %v652_v37 = vsel %vm644_vm4, %v623_v26, %v648_v33  ;;  %vm647_vm5 = vcmp.gt.f32.partialorder %v641_v34, 0.0  ;;  %v651_v38 = vmul.f32 0.2, %v641_v34 }
  0xe9   :  { %v635_v40 = vadd.f32 %v634_v39, %v545_v35  ;;  %v1516_v43 = vand.u32 4294901760, %v652_v37  ;;  %v786_v47 = vsub.f32 %v653_v32, %v1513_v36 }
  0xea   :  { %v655_v44 = vsel %vm647_vm5, %v641_v34, %v651_v38 }
  0xeb   :  { %v1518_v45 = vand.u32 4294901760, %v655_v44  ;;  %vm646_vm6 = vcmp.gt.f32.partialorder %v635_v40, 0.0  ;;  %v650_v46 = vmul.f32 0.2, %v635_v40  ;;  %v793_v51 = vsub.f32 %v652_v37, %v1516_v43 }
  0xec   :  { %v787_v55 = vand.u32 4294901760, %v786_v47 }
  0xed   :  { %v772_v48 = vsub.f32 %v655_v44, %v1518_v45  ;;  %v654_v49 = vsel %vm646_vm6, %v635_v40, %v650_v46  ;;  %1291 = vmatpush3.msra.mxu0 %v1518_v45  ;;  %v794_v59 = vand.u32 4294901760, %v793_v51 }
  0xee   :  { %v695_v52 = vand.u32 4294901760, %v654_v49  ;;  %1292 = vmatprep.subr.mxu0 %v1387_v42  ;;  %v788_v62 = vsub.f32 %v786_v47, %v787_v55 }
  0xef   :  { %v773_v53 = vand.u32 4294901760, %v772_v48  ;;  %v795_v0 = vsub.f32 %v793_v51, %v794_v59 }
  0xf0   :  { %v779_v54 = vsub.f32 %v654_v49, %v695_v52  ;;  %1293 = vmatpush3.msra.mxu0 %v695_v52  ;;  %v789_v1 = vand.u32 4294901760, %v788_v62 }
  0xf1   :  { %1294 = vmatprep.subr.mxu0 %v1387_v42  ;;  %v774_v57 = vsub.f32 %v772_v48, %v773_v53  ;;  %v796_v2 = vand.u32 4294901760, %v795_v0 }
  0xf2   :  { %1295 = vmatpush3.msra.mxu0 %v1513_v36  ;;  %v780_v58 = vand.u32 4294901760, %v779_v54 }
  0xf3   :  { %1296 = vmatprep.subr.mxu0 %v1387_v42  ;;  %v775_v60 = vand.u32 4294901760, %v774_v57 }
  0xf4   :  { %1297 = vmatpush3.msra.mxu0 %v1516_v43  ;;  %v781_v61 = vsub.f32 %v779_v54, %v780_v58 }
  0xf5   :  { %1299 = vmatmul.mubr.f32.vlgmr.msra.gmra.mxu0 %v740_v56  ;;  %1312 = vmatprep.subr.mxu0 %v1387_v42 }
  0xf6   :  { %1302 = vmatpush3.msra.mxu1 %v775_v60  ;;  %1313 = vmatpush3.msra.mxu0 %v772_v48  ;;  %v782_v63 = vand.u32 4294901760, %v781_v61 }
  0xf7   :  { %1303 = vmatprep.subr.mxu1 %v1387_v42  ;;  %1314 = vmatprep.subr.mxu0 %v1387_v42 }
  0xf8   :  { %1304 = vmatpush3.msra.mxu1 %v782_v63  ;;  %1315 = vmatpush3.msra.mxu0 %v779_v54 }
  0xf9   :  { %1305 = vmatprep.subr.mxu1 %v1387_v42  ;;  %1316 = vmatprep.subr.mxu0 %v1387_v42 }
  0xfa   :  { %1306 = vmatpush3.msra.mxu1 %v789_v1  ;;  %1317 = vmatpush3.msra.mxu0 %v786_v47 }
  0xfb   :  { %1307 = vmatprep.subr.mxu1 %v1387_v42  ;;  %1318 = vmatprep.subr.mxu0 %v1387_v42 }
  0xfc   :  { %1308 = vmatpush3.msra.mxu1 %v796_v2  ;;  %1319 = vmatpush3.msra.mxu0 %v793_v51 }
  0xfd   :  { %1310 = vmatmul.mubr.f32.vlgmr.msra.gmra.mxu1 %v1508_v20  ;;  %1320 = vmatprep.mubr.msk.f32.mxu0 %vm1388_vm1, %v1387_v42 }
  0xfe   :  { %1323 = vmatprep.subr.mxu1 %v1387_v42  ;;  %1334 = vmatprep.subr.mxu0 %v1387_v42 }
  0xff   :  { %1321 = vmatmul.mubr.f32.vlgmr.msra.gmra.mxu0 %v1511_v31  ;;  %1324 = vmatpush3.msra.mxu1 %v1518_v45 }
 0x100   :  { %1335 = vmatpush3.msra.mxu0 %v773_v53  ;;  %1325 = vmatprep.subr.mxu1 %v1387_v42 }
 0x101   :  { %1336 = vmatprep.subr.mxu0 %v1387_v42  ;;  %1326 = vmatpush3.msra.mxu1 %v695_v52 }
 0x102   :  { %1337 = vmatpush3.msra.mxu0 %v780_v58  ;;  %1327 = vmatprep.subr.mxu1 %v1387_v42 }
 0x103   :  { %1338 = vmatprep.subr.mxu0 %v1387_v42  ;;  %1328 = vmatpush3.msra.mxu1 %v1513_v36 }
 0x104   :  { %1339 = vmatpush3.msra.mxu0 %v787_v55  ;;  %1329 = vmatprep.subr.mxu1 %v1387_v42 }
 0x105   :  { %1340 = vmatprep.subr.mxu0 %v1387_v42  ;;  %1330 = vmatpush3.msra.mxu1 %v1516_v43 }
 0x106   :  { %1331 = vmatprep.mubr.msk.f32.mxu1 %vm1388_vm1, %v1387_v42  ;;  %1341 = vmatpush3.msra.mxu0 %v794_v59 }
 0x107   :  { %1332 = vmatmul.mubr.f32.vlgmr.msra.gmra.mxu1 %v738_v41  ;;  %1345 = vmatprep.subr.mxu1 %v1387_v42 }
 0x108   :  { %1342 = vmatprep.mubr.msk.f32.mxu0 %vm1388_vm1, %v1387_v42  ;;  %1346 = vmatpush3.msra.mxu1 %v1518_v45 }
 0x109   :  { %1343 = vmatmul.mubr.f32.vlgmr.msra.gmra.mxu0 %v1508_v20  ;;  %1347 = vmatprep.subr.mxu1 %v1387_v42 }
 0x10a   :  { %1348 = vmatpush3.msra.mxu1 %v695_v52  ;;  %1353 = vmatprep.mubr.msk.f32.mxu1 %vm1388_vm1, %v1387_v42 }
 0x10b   :  { %1349 = vmatprep.subr.mxu1 %v1387_v42 }
 0x10c   :  { %1350 = vmatpush3.msra.mxu1 %v1513_v36 }
 0x10d   :  { %1351 = vmatprep.subr.mxu1 %v1387_v42 }
 0x10e   :  { %1352 = vmatpush3.msra.mxu1 %v1516_v43 }
 0x10f   :  { %1354 = vmatmul.mubr.f32.vlgmr.msra.gmra.mxu1 %v1508_v20 }
 0x1b5   :  { %v742_v3 = vpop.f32.mrf.mxu0 }
 0x1b6   :  { %v743_v10 = vadd.f32 %v742_v3, %v661_v8 }
 0x1b7   :  { %v1300_v4 = vpop.f32.mrf.mxu0 }
 0x1bd   :  { %v833_v5 = vpop.f32.mrf.mxu1 }
 0x1be   :  { %v834_v11 = vadd.f32 %v833_v5, %v743_v10 }
 0x1bf   :  { %v1311_v6 = vpop.f32.mrf.mxu1  ;;  %v913_v7 = vpop.f32.mrf.mxu0 }
 0x1c0   :  { %v914_v13 = vadd.f32 %v913_v7, %v834_v11 }
 0x1c1   :  { %v1322_v9 = vpop.f32.mrf.mxu0 }
 0x1c7   :  { %v990_v12 = vpop.f32.mrf.mxu1 }
 0x1c8   :  { %v991_v16 = vadd.f32 %v990_v12, %v914_v13 }
 0x1c9   :  { %v1333_v14 = vpop.f32.mrf.mxu1  ;;  %v1073_v15 = vpop.f32.mrf.mxu0 }
 0x1ca   :  { %v1074_v42 = vadd.f32 %v1073_v15, %v991_v16 }
 0x1cb   :  { %v1344_v17 = vpop.f32.mrf.mxu0 }
 0x1cf   :  { %v1148_v18 = vpop.f32.mrf.mxu1 }
 0x1d0   :  { %v1149_v19 = vadd.f32 %v1148_v18, %v1074_v42 }
 0x1d1   :  { %v1355_v21 = vpop.f32.mrf.mxu1 }
 0x1d2   :  { %1362 = vtanh.f32 %v1149_v19 }
 0x1df   :  { %v1363_v20 = vpop.eup %1362 }
 0x1e0   :  { %v1159_v23 = vmul.f32 %v1363_v20, %v1157_v22 }
 0x1e2   :  { %v1166_v25 = vadd.f32 %v1164_v24, %v1159_v23 }
 0x1e4   :  { %1167 = vst [vmem:[#allocation2] sm:$0xff] %v1166_v25 }
 0x1e5   :  { %1375 = shalt.err (!%p1372_p4)
}
 0x1e6   :  { %1177 = dma.vmem_to_hbm [thread:$0]  %s1175_s21, 128, %s1581_s7, [#allocation3]  }
 0x1e7   :  { %1384 = dma.done.wait [#allocation3], 128  }
 0x1e8   :  { %1385 = vsyncadd [#allocation3], 4294967168 }
 0x1e9   :  { %1181 = vsyncpa [#allocation3], 1 }

</bundles_post_ra>
